<compile_context>
chip_gen: v6e
topology: v6e:2x2x1
jax: 0.10.0
libtpu: 0.0.40
codegen_flags: <defaults>
</compile_context>

<pallas_src>
import functools

import jax
import jax.numpy as jnp
from jax.experimental import pallas as pl
from jax.experimental.pallas import tpu as pltpu


_LANE = 128                              # TPU vreg lane width
_TARGET_BLOCK_BYTES = 2 * 1024 * 1024    # ~2 MiB per block


def _cdiv(a, b):
    return (a + b - 1) // b


def _result_dtype(dtype):
    # Match PyTorch promotion: float * 0.0 keeps dtype, int * 0.0 -> float32.
    if jnp.issubdtype(dtype, jnp.floating):
        return dtype
    return jnp.float32


def _pick_block_rows(rows, itemsize):
    # dtype-aware block size: 4096 rows f32, 8192 rows bf16, 16384 rows int8
    # (always a multiple of the dtype's packed-sublane count).
    target = max(8, _TARGET_BLOCK_BYTES // (_LANE * itemsize))
    if rows >= target:
        return target
    # Tiny input: one block covering the full row dim (legal because the block
    # dim equals the full array dim; perf is irrelevant at this size).
    return rows


def _mul_zero_kernel(x_ref, o_ref):
    # One vld + one vmul + one vst per vreg; the multiply is kept (instead of
    # emitting zeros) so NaN/Inf -> NaN and -0.0 semantics of `x * 0.0` hold.
    o_ref[...] = x_ref[...].astype(o_ref.dtype) * jnp.array(0.0, o_ref.dtype)


def _fill_zero_kernel(o_ref):
    # Write-only zero fill: no input read at all.
    o_ref[...] = jnp.zeros_like(o_ref)


def _lane_dense_zero_call(kernel, inputs, rows, out_dtype, block_rows):
    grid = (_cdiv(rows, block_rows),)
    spec = pl.BlockSpec((block_rows, _LANE), lambda i: (i, 0))
    return pl.pallas_call(
        kernel,
        out_shape=jax.ShapeDtypeStruct((rows, _LANE), out_dtype),
        grid=grid,
        in_specs=[spec] * len(inputs),
        out_specs=spec,
        compiler_params=pltpu.CompilerParams(
            dimension_semantics=("parallel",)),
    )(*inputs)


def _mul_by_zero(x):
    """stride == 1 path: faithful `x * 0.0` (reads x once, writes out once)."""
    out_shape = x.shape
    total = x.size
    out_dtype = _result_dtype(x.dtype)

    rows = _cdiv(total, _LANE)
    padded_total = rows * _LANE
    x_flat = x.reshape(-1)
    if padded_total != total:
        # Rare corner: total not a multiple of 128 -> minimal pad only.
        x_flat = jnp.pad(x_flat, (0, padded_total - total))
    x2 = x_flat.reshape(rows, _LANE)

    block_rows = _pick_block_rows(rows, jnp.dtype(x.dtype).itemsize)
    out2 = _lane_dense_zero_call(
        _mul_zero_kernel, (x2,), rows, out_dtype, block_rows)

    out_flat = out2.reshape(-1)
    if padded_total != total:
        out_flat = out_flat[:total]
    return out_flat.reshape(out_shape)


def _strided_zeros(x, stride):
    """stride > 1 path: output of x[:, :, ::s, ::s] * 0.0 is all zeros, so the
    kernel is write-only and x is never read (no strided-slice HBM pass)."""
    n, c, h, w = x.shape
    h_out = _cdiv(h, stride)
    w_out = _cdiv(w, stride)
    out_shape = (n, c, h_out, w_out)
    out_dtype = _result_dtype(x.dtype)

    total = n * c * h_out * w_out
    rows = _cdiv(total, _LANE)
    block_rows = _pick_block_rows(rows, jnp.dtype(out_dtype).itemsize)
    out2 = _lane_dense_zero_call(
        _fill_zero_kernel, (), rows, out_dtype, block_rows)

    out_flat = out2.reshape(-1)
    if rows * _LANE != total:
        out_flat = out_flat[:total]
    return out_flat.reshape(out_shape)


def zero_forward(x, *, stride):
    """Forward of the DARTS `Zero` op for NCHW input x."""
    if stride == 1:
        return _mul_by_zero(x)
    # TODO(synk): the stride>1 fast path never reads x, so strict NaN/Inf->NaN
    # propagation of `x_sub * 0.0` is not reproduced there; values match the
    # reference for all finite inputs and DARTS' Zero never relies on NaN.
    return _strided_zeros(x, stride)


# ---- pure-JAX reference ------------------------------------------------------
def ref_forward(x, stride):
    if stride == 1:
        return x * 0.0
    return x[:, :, ::stride, ::stride] * 0.0


if __name__ == "__main__":
    key = jax.random.PRNGKey(0)
    x = jax.random.normal(key, (2, 4, 16, 16), jnp.float32)

    for stride in (1, 2):
        fwd = jax.jit(functools.partial(zero_forward, stride=stride))
        out = jax.block_until_ready(fwd(x))
        ref = ref_forward(x, stride)
        assert out.shape == ref.shape, (stride, out.shape, ref.shape)
        assert out.dtype == ref.dtype, (stride, out.dtype, ref.dtype)
        assert bool(jnp.array_equal(out, ref)), float(
            jnp.max(jnp.abs(out - ref)))

    # bf16 sanity check (exercises the dtype-aware block sizing path).
    xb = x.astype(jnp.bfloat16)
    outb = jax.block_until_ready(
        jax.jit(functools.partial(zero_forward, stride=1))(xb))
    assert outb.dtype == jnp.bfloat16
    assert bool(jnp.array_equal(outb, xb * 0.0))

    print("KERNEL_OK")
</pallas_src>

<mosaic_0001>
module attributes {stable_mosaic.version = 11 : i64} {
  func.func @_mul_zero_kernel(%arg0: i32, %arg1: memref<16x128xf32, #tpu.memory_space<vmem>>, %arg2: memref<16x128xf32, #tpu.memory_space<vmem>>) attributes {dimension_semantics = [#tpu.dimension_semantics<parallel>], iteration_bounds = array<i64: 1>, scalar_prefetch = 0 : i64, scratch_operands = 0 : i64, tpu.core_type = #tpu.core_type<tc>, window_params = [{transform_indices = @transform_0, window_bounds = array<i64: 16, 128>}, {transform_indices = @transform_1, window_bounds = array<i64: 16, 128>}]} {
    %c0 = arith.constant 0 : index
    %c0_0 = arith.constant 0 : index
    %0 = vector.load %arg1[%c0, %c0_0] : memref<16x128xf32, #tpu.memory_space<vmem>>, vector<16x128xf32>
    %cst = arith.constant 0.000000e+00 : f32
    %1 = vector.broadcast %cst : f32 to vector<16x128xf32>
    %2 = arith.mulf %0, %1 : vector<16x128xf32>
    %c0_1 = arith.constant 0 : index
    %c0_2 = arith.constant 0 : index
    %3 = vector.load %arg2[%c0_1, %c0_2] : memref<16x128xf32, #tpu.memory_space<vmem>>, vector<16x128xf32>
    tpu.vector_store %arg2[%c0_1, %c0_2], %2 {strides = array<i32>} : memref<16x128xf32, #tpu.memory_space<vmem>>, vector<16x128xf32>,
    return
  }
  func.func @transform_0(%arg0: i32) -> (i32, i32) {
    %c0_i32 = arith.constant 0 : i32
    %c0_i32_0 = arith.constant 0 : i32
    return %arg0, %c0_i32 : i32, i32
  }
  func.func @transform_1(%arg0: i32) -> (i32, i32) {
    %c0_i32 = arith.constant 0 : i32
    %c0_i32_0 = arith.constant 0 : i32
    return %arg0, %c0_i32 : i32, i32
  }
}

</mosaic_0001>

<bundles_post_ra>
// kernel: zero_forward.1
= control target key start
LH: loop header
LB: loop body
LE: loop exit
PB: predicated region body
PF: predicated region fallthrough
CT: control target
= control target key end

     0   :  { %s40_s0 = inlined_call_operand.vmem [shape: f32[16,128], index: 0, kind: input, shape index: {}]   ;;  %s41_s1 = inlined_call_operand.vmem [shape: f32[16,128], index: 1, kind: output, shape index: {}]  }
   0x1   :  { %v8_v0 = vld [vmem:[%s40_s0] sm:$0xff]  ;;  %v9_v1 = vld [vmem:[%s40_s0 + $0x8] sm:$0xff] }
   0x2   :  { %v10_v2 = vmul.f32 0.0, %v8_v0  ;;  %v11_v3 = vmul.f32 0.0, %v9_v1 }
   0x4   :  { %12 = vst [vmem:[%s41_s1] sm:$0xff] %v10_v2  ;;  %13 = vst [vmem:[%s41_s1 + $0x8] sm:$0xff] %v11_v3 }

</bundles_post_ra>
